<compile_context>
chip_gen: v6e
topology: v6e:2x2x1
jax: 0.10.0
libtpu: 0.0.40
codegen_flags: <defaults>
</compile_context>

<pallas_src>
import jax
import jax.numpy as jnp
from jax import lax
from jax.experimental import pallas as pl
from jax.experimental.pallas import tpu as pltpu


def _round_up(x, m):
    return (x + m - 1) // m * m


# ---------------------------------------------------------------------------
# Path A: fused table VMEM-resident; gather via one-hot MXU matmul.
# ---------------------------------------------------------------------------
def _make_vmem_kernel(Hp, matmul_dtype):
    def kernel(ids_ref,                  # VMEM (tb, 1) int32
               tab_ref,                  # VMEM (Np, Hp+Dp)   resident
               w_ref, b_ref,             # VMEM (Hp, Dp), (1, Dp) resident
               out_ref):                 # VMEM (tb, Dp) f32
        ids = ids_ref[...]                                   # (tb, 1)
        tb = ids.shape[0]
        Np = tab_ref.shape[0]
        iota = lax.broadcasted_iota(jnp.int32, (tb, Np), 1)
        onehot = jnp.where(ids == iota,
                           jnp.array(1, matmul_dtype),
                           jnp.array(0, matmul_dtype))       # (tb, Np)
        # Gather both tables' rows with a single MXU matmul (row copies).
        gathered = jnp.dot(onehot, tab_ref[...],
                           preferred_element_type=jnp.float32)  # (tb, W) f32
        text = gathered[:, :Hp].astype(matmul_dtype)
        id_part = gathered[:, Hp:]                            # f32
        # lm_projection: Linear + ReLU (f32 accumulate), then fusion 'add'.
        proj = jnp.dot(text, w_ref[...], preferred_element_type=jnp.float32)
        proj = jnp.maximum(proj + b_ref[...], 0.0)
        out_ref[...] = (proj + id_part).astype(out_ref.dtype)

    return kernel


# ---------------------------------------------------------------------------
# Path B: fused table in HBM; per-row DMA gather, double-buffered across grid
# steps; all row DMAs of a tile signal one shared semaphore per slot and
# completion is a single bulk wait on the slot buffer.
# ---------------------------------------------------------------------------
def _make_hbm_kernel(tb, Hp):
    def kernel(ids_ref,                  # SMEM (Bp,) int32 (scalar prefetch)
               fused_hbm,                # HBM  (N, W)      (pl.ANY)
               w_ref, b_ref,             # VMEM (Hp, Dp), (1, Dp) resident
               out_ref,                  # VMEM (tb, Dp) f32
               buf, sems):               # VMEM (2, tb, W), DMA sems (2,)
        i = pl.program_id(0)
        nt = pl.num_programs(0)
        slot = i % 2

        def issue_tile(tile_idx, s):
            base = tile_idx * tb

            def body(r, carry):
                row = ids_ref[base + r]
                pltpu.make_async_copy(fused_hbm.at[row], buf.at[s, r],
                                      sems.at[s]).start()
                return carry

            # Unrolled issue loop: lets scalar address calc + DMA-descriptor
            # pushes co-issue across bundles.
            lax.fori_loop(0, tb, body, 0, unroll=8)

        # Prime the pipeline with the first tile.
        @pl.when(i == 0)
        def _():
            issue_tile(0, 0)

        # Prefetch the next tile into the other slot; these DMAs overlap this
        # step's wait/compute/store.
        @pl.when(i + 1 < nt)
        def _():
            issue_tile(i + 1, 1 - slot)

        # Single bulk wait: all tb row-copies of this slot signal sems[slot],
        # and DMA semaphores count bytes, so one wait on the whole (tb, W)
        # slot buffer covers all of them (replaces 2*tb per-row waits).
        pltpu.make_async_copy(buf.at[slot], buf.at[slot], sems.at[slot]).wait()

        gathered = buf[slot]                                  # (tb, W)
        text = gathered[:, :Hp]
        id_part = gathered[:, Hp:].astype(jnp.float32)
        proj = jnp.dot(text, w_ref[...], preferred_element_type=jnp.float32)
        proj = jnp.maximum(proj + b_ref[...], 0.0)
        out_ref[...] = (proj + id_part).astype(out_ref.dtype)

    return kernel


def te_item_encoder_with_id_womlp(batch_ids, id_table, text_table, w_t, bias, *,
                                  matmul_dtype=jnp.bfloat16,
                                  tb=None,
                                  vmem_table_budget_bytes=4 * 1024 * 1024,
                                  force_hbm_gather=False,
                                  trim_output=True):
    """Pallas-backed forward of TEItemEncoderWithID_WOMLP (fusion='add').

    batch_ids : int32 [B]          item ids
    id_table  : f32 [num_items, D] id_embeddings.weight (row 0 zero: padding_idx=0)
    text_table: f32 [num_items, H] text_embeddings.weight
    w_t       : f32 [H, D]         lm_projection Linear weight, pre-transposed
    bias      : f32 [1, D]         lm_projection Linear bias
    matmul_dtype : storage dtype of the fused table / weight (operands of the
        MXU matmuls).  bf16 is recommended on v5e/v6e/v7x (halves gathered-row
        and weight HBM bytes); pass jnp.float32 for exact module semantics.
        Accumulation, bias, ReLU and the fusion add are always f32.
    trim_output : if False, return the padded lane-dense [Bp, Dp] slab and skip
        the extra HBM round trip of the [:B, :D] slice (fuse in the consumer).
    returns   : f32 [B, D] (or [Bp, Dp] if trim_output=False)
    """
    num_items, D = id_table.shape
    H = text_table.shape[1]
    B = batch_ids.shape[0]

    Dp = _round_up(D, 128)                # lane-dense output / weight columns
    Hp = _round_up(H, 128)                # lane-dense text columns / weight rows
    W = Hp + Dp
    Np = _round_up(num_items, 8)
    isz = jnp.dtype(matmul_dtype).itemsize

    # One-time table preprocessing (zero padding keeps the math identical):
    # one fused row-major table so a single gathered row carries both the text
    # features and the id embedding.
    fused = jnp.concatenate(
        [jnp.pad(text_table, ((0, Np - num_items), (0, Hp - H))),
         jnp.pad(id_table, ((0, Np - num_items), (0, Dp - D)))],
        axis=1).astype(matmul_dtype)                          # [Np, W]
    w_p = jnp.pad(w_t, ((0, Hp - H), (0, Dp - D))).astype(matmul_dtype)
    b_p = jnp.pad(bias, ((0, 0), (0, Dp - D))).astype(jnp.float32)

    # Batch tiling: multiple of 8 sublanes, >=2 grid tiles whenever B allows
    # (v7x has 2 TensorCores), up to 256 rows/tile for large batches (fewer
    # grid steps on v5e/v6e).
    if tb is None:
        tb = min(256, max(8, _round_up(pl.cdiv(B, 2), 8)))
    Bp = _round_up(B, tb)
    num_tiles = Bp // tb
    ids = jnp.pad(batch_ids.astype(jnp.int32), (0, Bp - B))   # pad with id 0

    # Advisory cost: true (unpadded) dims for flops; padded output writeback.
    cost = pl.CostEstimate(
        flops=2 * B * H * D,
        transcendentals=0,
        bytes_accessed=(B * (H + D) * isz       # gathered rows
                        + Hp * Dp * isz         # projection weight
                        + Dp * 4                # bias
                        + Bp * 4                # ids
                        + Bp * Dp * 4))         # padded output writeback

    table_bytes = Np * W * isz
    use_vmem_table = ((not force_hbm_gather)
                      and table_bytes <= vmem_table_budget_bytes
                      and Np <= 8192)

    if use_vmem_table:
        # -------- Path A: VMEM-resident fused table, one-hot MXU gather. ----
        vmem_est = (2 * table_bytes             # resident table (2 pipeline bufs)
                    + 2 * Hp * Dp * isz         # resident weight
                    + 2 * 8 * Dp * 4            # bias (sublane padded)
                    + 2 * tb * 128 * 4          # ids block (lane padded)
                    + 2 * tb * Dp * 4           # output
                    + tb * (Np + W) * 4)        # in-kernel temporaries
        vmem_limit = int(min(32 * 1024 * 1024,
                             max(8 * 1024 * 1024, 1.3 * vmem_est)))
        out = pl.pallas_call(
            _make_vmem_kernel(Hp, matmul_dtype),
            out_shape=jax.ShapeDtypeStruct((Bp, Dp), jnp.float32),
            grid=(num_tiles,),
            in_specs=[
                pl.BlockSpec((tb, 1), lambda i: (i, 0)),      # ids
                pl.BlockSpec((Np, W), lambda i: (0, 0)),      # fused table (resident)
                pl.BlockSpec((Hp, Dp), lambda i: (0, 0)),     # weight (resident)
                pl.BlockSpec((1, Dp), lambda i: (0, 0)),      # bias (resident)
            ],
            out_specs=pl.BlockSpec((tb, Dp), lambda i: (i, 0)),
            compiler_params=pltpu.CompilerParams(
                dimension_semantics=("parallel",),            # megacore on v7x
                vmem_limit_bytes=vmem_limit),
            cost_estimate=cost,
        )(ids.reshape(Bp, 1), fused, w_p, b_p)
    else:
        # -------- Path B: HBM table, per-row DMA gather, double-buffered. ---
        vmem_est = (2 * tb * W * isz            # gather scratch (2 slots)
                    + 2 * Hp * Dp * isz         # resident weight
                    + 2 * 8 * Dp * 4            # bias
                    + 2 * tb * Dp * 4)          # output
        vmem_limit = int(min(32 * 1024 * 1024,
                             max(8 * 1024 * 1024, 1.3 * vmem_est)))
        out = pl.pallas_call(
            _make_hbm_kernel(tb, Hp),
            out_shape=jax.ShapeDtypeStruct((Bp, Dp), jnp.float32),
            grid_spec=pltpu.PrefetchScalarGridSpec(
                num_scalar_prefetch=1,
                grid=(num_tiles,),
                in_specs=[
                    pl.BlockSpec(memory_space=pl.ANY),               # fused table (HBM)
                    pl.BlockSpec((Hp, Dp), lambda i, ids: (0, 0)),   # weight (resident)
                    pl.BlockSpec((1, Dp), lambda i, ids: (0, 0)),    # bias (resident)
                ],
                out_specs=pl.BlockSpec((tb, Dp), lambda i, ids: (i, 0)),
                scratch_shapes=[
                    pltpu.VMEM((2, tb, W), matmul_dtype),    # double-buffered gather
                    pltpu.SemaphoreType.DMA((2,)),           # one shared sem per slot
                ]),
            compiler_params=pltpu.CompilerParams(
                # The manual cross-step double buffering assumes sequential
                # grid execution.  TODO(synk): add a leading core dimension to
                # use both v7x TensorCores on this path too.
                dimension_semantics=("arbitrary",),
                vmem_limit_bytes=vmem_limit),
            cost_estimate=cost,
        )(ids, fused, w_p, b_p)

    if trim_output:
        return out[:B, :D]
    return out


def _reference(batch_ids, id_table, text_table, w_t, bias):
    id_embs = jnp.take(id_table, batch_ids, axis=0)
    text_embs = jnp.take(text_table, batch_ids, axis=0)
    proj = jnp.maximum(text_embs @ w_t + bias, 0.0)
    return proj + id_embs


if __name__ == "__main__":
    # Small shapes consistent with the module.
    num_items = 64       # train_data.num_items
    embed_dim = 32       # embed_dim (D)
    hidden_size = 64     # text_encoder_config.hidden_size (H)
    batch = 20           # item ids in the batch (exercises tiling + padding)

    key = jax.random.PRNGKey(0)
    k_id, k_text, k_w, k_b, k_batch = jax.random.split(key, 5)

    id_table = jax.random.normal(k_id, (num_items, embed_dim), jnp.float32) * 0.1
    id_table = id_table.at[0].set(0.0)          # padding_idx=0
    text_table = jax.random.normal(k_text, (num_items, hidden_size),
                                   jnp.float32) * 0.1
    # PyTorch Linear weight is [embed_dim, hidden_size]; we take it pre-transposed.
    w_t = jax.random.normal(k_w, (hidden_size, embed_dim), jnp.float32) * 0.1
    bias = jax.random.normal(k_b, (1, embed_dim), jnp.float32) * 0.1
    batch_ids = jax.random.randint(k_batch, (batch,), 0, num_items, jnp.int32)

    ref = _reference(batch_ids, id_table, text_table, w_t, bias)

    # Path A (VMEM-resident fused table), f32 operands.  Tolerance allows for
    # the MXU handling the f32 one-hot gather matmul via bf16 passes under the
    # default matmul precision.
    out_f32 = jax.block_until_ready(te_item_encoder_with_id_womlp(
        batch_ids, id_table, text_table, w_t, bias, matmul_dtype=jnp.float32))
    assert out_f32.shape == (batch, embed_dim)
    assert jnp.allclose(out_f32, ref, atol=2e-3, rtol=2e-3)

    # Path A with bf16 operand storage (recommended on v5e/v6e/v7x).
    out_bf16 = jax.block_until_ready(te_item_encoder_with_id_womlp(
        batch_ids, id_table, text_table, w_t, bias, matmul_dtype=jnp.bfloat16))
    assert out_bf16.shape == (batch, embed_dim)
    assert jnp.allclose(out_bf16, ref, atol=2e-2, rtol=2e-2)

    # Path B (HBM fused table, double-buffered per-row DMA gather, shared-sem
    # bulk wait), exact f32 semantics.
    out_dma = jax.block_until_ready(te_item_encoder_with_id_womlp(
        batch_ids, id_table, text_table, w_t, bias, matmul_dtype=jnp.float32,
        force_hbm_gather=True))
    assert out_dma.shape == (batch, embed_dim)
    assert jnp.allclose(out_dma, ref, atol=1e-5, rtol=1e-5)

    print("KERNEL_OK")
</pallas_src>

<mosaic_0001>
module attributes {stable_mosaic.version = 11 : i64} {
  func.func @kernel(%arg0: i32, %arg1: memref<16x1xi32, #tpu.memory_space<vmem>>, %arg2: memref<64x256xf32, #tpu.memory_space<vmem>>, %arg3: memref<128x128xf32, #tpu.memory_space<vmem>>, %arg4: memref<1x128xf32, #tpu.memory_space<vmem>>, %arg5: memref<16x128xf32, #tpu.memory_space<vmem>>) attributes {dimension_semantics = [#tpu.dimension_semantics<parallel>], iteration_bounds = array<i64: 2>, scalar_prefetch = 0 : i64, scratch_operands = 0 : i64, tpu.core_type = #tpu.core_type<tc>, window_params = [{transform_indices = @transform_0, window_bounds = array<i64: 16, 1>}, {pipeline_mode = #tpu.pipeline_mode<synchronous>, transform_indices = @transform_1, window_bounds = array<i64: 64, 256>}, {pipeline_mode = #tpu.pipeline_mode<synchronous>, transform_indices = @transform_2, window_bounds = array<i64: 128, 128>}, {pipeline_mode = #tpu.pipeline_mode<synchronous>, transform_indices = @transform_3, window_bounds = array<i64: 1, 128>}, {transform_indices = @transform_4, window_bounds = array<i64: 16, 128>}]} {
    %c0 = arith.constant 0 : index
    %c0_0 = arith.constant 0 : index
    %0 = vector.load %arg1[%c0, %c0_0] : memref<16x1xi32, #tpu.memory_space<vmem>>, vector<16x1xi32>
    %1 = tpu.iota {dimensions = array<i32: 1>} : vector<16x64xi32>
    %2 = vector.broadcast %0 : vector<16x1xi32> to vector<16x64xi32>
    %3 = arith.cmpi eq, %2, %1 : vector<16x64xi32>
    %cst = arith.constant 1.000000e+00 : f32
    %cst_1 = arith.constant 0.000000e+00 : f32
    %4 = vector.broadcast %cst : f32 to vector<16x64xf32>
    %5 = vector.broadcast %cst_1 : f32 to vector<16x64xf32>
    %6 = arith.select %3, %4, %5 : vector<16x64xi1>, vector<16x64xf32>
    %c0_2 = arith.constant 0 : index
    %c0_3 = arith.constant 0 : index
    %7 = vector.load %arg2[%c0_2, %c0_3] : memref<64x256xf32, #tpu.memory_space<vmem>>, vector<64x256xf32>
    %cst_4 = arith.constant dense<0.000000e+00> : vector<16x256xf32>
    %8 = tpu.matmul %6, %7, %cst_4 {dimension_numbers = #tpu.dot_dimension_numbers<[1], [0], [0], [1], [0, 0, 1, 1], [], []>} : vector<16x64xf32>, vector<64x256xf32>, vector<16x256xf32> -> vector<16x256xf32>
    %9 = vector.extract_strided_slice %8 {offsets = [0, 0], sizes = [16, 128], strides = [1, 1]} : vector<16x256xf32> to vector<16x128xf32>
    %10 = vector.extract_strided_slice %8 {offsets = [0, 128], sizes = [16, 128], strides = [1, 1]} : vector<16x256xf32> to vector<16x128xf32>
    %c0_5 = arith.constant 0 : index
    %c0_6 = arith.constant 0 : index
    %11 = vector.load %arg3[%c0_5, %c0_6] : memref<128x128xf32, #tpu.memory_space<vmem>>, vector<128x128xf32>
    %cst_7 = arith.constant dense<0.000000e+00> : vector<16x128xf32>
    %12 = tpu.matmul %9, %11, %cst_7 {dimension_numbers = #tpu.dot_dimension_numbers<[1], [0], [0], [1], [0, 0, 1, 1], [], []>} : vector<16x128xf32>, vector<128x128xf32>, vector<16x128xf32> -> vector<16x128xf32>
    %c0_8 = arith.constant 0 : index
    %c0_9 = arith.constant 0 : index
    %13 = vector.load %arg4[%c0_8, %c0_9] : memref<1x128xf32, #tpu.memory_space<vmem>>, vector<1x128xf32>
    %14 = vector.broadcast %13 : vector<1x128xf32> to vector<16x128xf32>
    %15 = arith.addf %12, %14 : vector<16x128xf32>
    %cst_10 = arith.constant 0.000000e+00 : f32
    %16 = vector.broadcast %cst_10 : f32 to vector<16x128xf32>
    %17 = arith.maximumf %15, %16 : vector<16x128xf32>
    %18 = arith.addf %17, %10 : vector<16x128xf32>
    %c0_11 = arith.constant 0 : index
    %c0_12 = arith.constant 0 : index
    %19 = vector.load %arg5[%c0_11, %c0_12] : memref<16x128xf32, #tpu.memory_space<vmem>>, vector<16x128xf32>
    tpu.vector_store %arg5[%c0_11, %c0_12], %18 {strides = array<i32>} : memref<16x128xf32, #tpu.memory_space<vmem>>, vector<16x128xf32>,
    return
  }
  func.func @transform_0(%arg0: i32) -> (i32, i32) {
    %c0_i32 = arith.constant 0 : i32
    %c0_i32_0 = arith.constant 0 : i32
    return %arg0, %c0_i32 : i32, i32
  }
  func.func @transform_1(%arg0: i32) -> (i32, i32) {
    %c0_i32 = arith.constant 0 : i32
    %c0_i32_0 = arith.constant 0 : i32
    %c0_i32_1 = arith.constant 0 : i32
    return %c0_i32, %c0_i32_0 : i32, i32
  }
  func.func @transform_2(%arg0: i32) -> (i32, i32) {
    %c0_i32 = arith.constant 0 : i32
    %c0_i32_0 = arith.constant 0 : i32
    %c0_i32_1 = arith.constant 0 : i32
    return %c0_i32, %c0_i32_0 : i32, i32
  }
  func.func @transform_3(%arg0: i32) -> (i32, i32) {
    %c0_i32 = arith.constant 0 : i32
    %c0_i32_0 = arith.constant 0 : i32
    %c0_i32_1 = arith.constant 0 : i32
    return %c0_i32, %c0_i32_0 : i32, i32
  }
  func.func @transform_4(%arg0: i32) -> (i32, i32) {
    %c0_i32 = arith.constant 0 : i32
    %c0_i32_0 = arith.constant 0 : i32
    return %arg0, %c0_i32 : i32, i32
  }
}

</mosaic_0001>

<bundles_post_ra>
// kernel: tpu_custom_call.1
= control target key start
LH: loop header
LB: loop body
LE: loop exit
PB: predicated region body
PF: predicated region fallthrough
CT: control target
= control target key end

     0   :  { %9 = vsyncpa [#allocation3], 0  ;;  %s994_s0 = inlined_call_operand.vmem [shape: s32[32,1], index: 0, kind: input, shape index: {}]   ;;  %s995_s1 = inlined_call_operand.hbm [shape: f32[64,256], index: 1, kind: input, shape index: {}]   ;;  %s996_s2 = inlined_call_operand.hbm [shape: f32[128,128], index: 2, kind: input, shape index: {}]   ;;  %s997_s3 = inlined_call_operand.vmem [shape: f32[1,128], index: 3, kind: input, shape index: {}]   ;;  %s998_s4 = inlined_call_operand.hbm [shape: f32[32,128], index: 4, kind: output, shape index: {}]  }
   0x1   :  { %10 = vsyncpa [#allocation6], 0 }
   0x2   :  { %11 = vsyncpa [#allocation4], 0 }
   0x3   :  { %13 = vsyncpa [#allocation4 + $0x1], 0  ;;  %s845_s15 = smov 0   ;;  %s847_s16 = smov 0  }
   0x4   :  { %s849_s17 = smov 0   ;;  %s851_s18 = smov 0  }
   0x5 LB: > { %s866_s19 = sadd.s32 4294967295, %s807_s18   ;;  %s545_s20 = sadd.s32 4294967294, %s807_s18   ;;  %s807_s18 = sphi %s851_s18, %s1012_s18   ;;  %s803_s17 = sphi %s849_s17, %s1011_s17   ;;  %s799_s16 = sphi %s847_s16, %s1010_s16   ;;  %s795_s15 = sphi %s845_s15, %s1009_s15  }
   0x6   : > { %s870_s21 = sadd.s32 1, %s807_s18   ;;  %s115_s22 = sadd.s32 1, %s803_s17 }
   0x7   : > { %s112_s23 = ssub.s32 %s807_s18, %s870_s21  ;;  %p125_p0 = scmp.ne.s32.totalorder %s803_s17, %s799_s16 }
   0x8   : > { %p113_p1 = scmp.eq.s32.totalorder %s112_s23, 0  ;;  %p126_p2 = scmp.eq.s32.totalorder %s866_s19, 1 }
   0x9   : > { %p131_p3 = scmp.ne.s32.totalorder %s799_s16, %s795_s15  ;;  %p132_p4 = scmp.eq.s32.totalorder %s545_s20, 1 }
   0xa   : > { %s881_s24 = scalar_select %p113_p1, %s803_s17, %s115_s22  }
   0xb   : > { %p883_p5 = por %p126_p2, %p125_p0  ;;  %p887_p6 = por %p132_p4, %p131_p3 }
   0xc   : > { %p546_p7 = scmp.ge.s32.totalorder %s807_s18, 1  ;;  %p139_p8 = scmp.lt.s32.totalorder %s807_s18, 3 }
   0xd   : > { %s1001_s26 = scalar_select %p887_p6, 1, 0 }
   0xe   : > { %p999_p9 = scmp.eq.s32.totalorder %s866_s19, 0  ;;  %p894_p10 = pnand %p546_p7, %p139_p8 }
   0xf   : > { %s809_s28 = smov [#allocation2]   ;;  %s810_s5 = smov [#allocation5]  }
  0x10   : > { %s151_s29 = sshll.u32 %s809_s28, 4  ;;  %p628_p11 = pneg %p894_p10  ;;  %s152_s29 = int_to_ptr.vmem [resolvable:$true] %s151_s29 }
  0x11   : > { %s164_s6 = sshll.u32 %s810_s5, 4  ;;  %s698_s7 = scalar_lea.vmem %s152_s29, 2048  ;;  %s165_s6 = int_to_ptr.vmem [resolvable:$true] %s164_s6 }
  0x12   : > { %p902_p12 = pnand %p999_p9, %p628_p11  ;;  %p699_p0 = scmp.ne.s32.totalorder %s152_s29, %s698_s7 }
  0x13   : > { %p706_p3 = scmp.lt.s32.totalorder %s152_s29, %s152_s29  ;;  %p707_p4 = scmp.lt.s32.totalorder %s698_s7, %s698_s7 }
  0x14   : > { %p689_p13 = pneg %p902_p12 }
  0x15   : > { %p708_p7 = por %p707_p4, %p706_p3 }
  0x16   : > { %p701_p1 = pnand %p699_p0, %p689_p13 }
  0x18   : > { %p702_p2 = pneg %p701_p1 }
  0x1a   : > { %p709_p8 = pnand %p708_p7, %p702_p2 }
  0x1c   : > { %712 = shalt.err (!%p709_p8)
}
  0x1d   : > { %s811_s8 = smov 256   ;;  %s812_s9 = smov 16  }
  0x1e   : > { %631 = dma.hbm_to_vmem [thread:$0]  (!%p902_p12), %s995_s1, 2048, %s152_s29, [#allocation3], %s811_s8, %s811_s8, %s812_s9  }
  0x1f   : > { %s724_s12 = scalar_lea.vmem %s165_s6, 2048  ;;  %p732_p9 = scmp.lt.s32.totalorder %s165_s6, %s165_s6 }
  0x20   : > { %p725_p11 = scmp.ne.s32.totalorder %s165_s6, %s724_s12  ;;  %p733_p6 = scmp.lt.s32.totalorder %s724_s12, %s724_s12 }
  0x22   : > { %p727_p0 = pnand %p725_p11, %p689_p13  ;;  %p734_p3 = por %p733_p6, %p732_p9 }
  0x24   : > { %p728_p1 = pneg %p727_p0 }
  0x26   : > { %p735_p2 = pnand %p734_p3, %p728_p1 }
  0x28   : > { %738 = shalt.err (!%p735_p2)
}
  0x29   : > { %s813_s13 = smov 128   ;;  %s814_s14 = smov 8  }
  0x2a   : > { %634 = dma.hbm_to_vmem [thread:$0]  (!%p902_p12), %s996_s2, 2048, %s165_s6, [#allocation6], %s813_s13, %s813_s13, %s814_s14  }
  0x2b   : > { %192 = sbr.rel (%p894_p10) target bundleno = 597 (0x255), region = 36  ;;  %p1004_p4 = scmp.eq.s32.totalorder (!%p894_p10), %s866_s19, 0 }
  0x30   : > { %782 = dma.done.wait (%p1004_p4), [#allocation3], 2048   ;;  %p1005_p13 = pmov %p1004_p4 }
  0x31   : > { %p1006_p6 = pmov %p1004_p4 }
  0x32   : > { %784 = vsyncadd (%p1005_p13), [#allocation3], 4294965248 }
  0x33   : > { %786 = dma.done.wait (%p1006_p6), [#allocation6], 2048   ;;  %p1007_p9 = pmov %p1004_p4 }
  0x34   : > { %s554_s23 = sshll.u32 %s866_s19, 1  ;;  %v815_v0 = vmov 0   ;;  %v816_v1 = vmov 0.0   ;;  %v258_v3 = vld [vmem:[#allocation2 + $0x78] sm:$0xff]  ;;  %v257_v4 = vld [vmem:[#allocation2 + $0x70] sm:$0xff]  ;;  %v256_v5 = vld [vmem:[#allocation2 + $0x68] sm:$0xff]  ;;  %v231_v34 = vlaneseq }
  0x35   : > { %788 = vsyncadd (%p1007_p9), [#allocation6], 4294965248  ;;  %686 = vset.pattern.permute.xlu0 %v815_v0  ;;  %p223_p12 = scmp.lt.s32.totalorder %s554_s23, 3  ;;  %330 = vmatprep.mubr.f32.mxu0 %v816_v1  ;;  %v255_v6 = vld [vmem:[#allocation2 + $0x60] sm:$0xff]  ;;  %v254_v8 = vld [vmem:[#allocation2 + $0x58] sm:$0xff]  ;;  %vm259_vm0 = vcmask 523264  }
  0x36   : > { %282 = vmatprep.subr.mxu0 %v258_v3  ;;  %v253_v9 = vld [vmem:[#allocation2 + $0x50] sm:$0xff]  ;;  %v252_v10 = vld [vmem:[#allocation2 + $0x48] sm:$0xff]  ;;  %v251_v11 = vld [vmem:[#allocation2 + $0x40] sm:$0xff]  ;;  %v232_v35 = vand.u32 127, %v231_v34  ;;  %s219_s5 = sand.u32 1, %s799_s16   ;;  %s564_s11 = sshll.u32 %s866_s19, 8 }
  0x37   : > { %s1014_s23 = smov (!%p223_p12, %s554_s23), 3  ;;  %283 = vmatpush1.msra.mxu0 %v257_v4  ;;  %v250_v12 = vld [vmem:[#allocation2 + $0x38] sm:$0xff]  ;;  %v357_v14 = vld [vmem:[#allocation5 + $0x70] sm:$0xff]  ;;  %v248_v16 = vld [vmem:[#allocation2 + $0x28] sm:$0xff]  ;;  %s553_s6 = sshll.u32 %s219_s5, 4 }
  0x38   : > { %s555_s27 = sshll.u32 %s1014_s23, 3  ;;  %284 = vmatprep.subr.mxu0 %v256_v5  ;;  %v358_v13 = vld [vmem:[#allocation5 + $0x78] sm:$0xff]  ;;  %v249_v15 = vld [vmem:[#allocation2 + $0x30] sm:$0xff]  ;;  %v356_v17 = vld [vmem:[#allocation5 + $0x68] sm:$0xff]  ;;  %s221_s9 = scalar_lea.vmem [#allocation7], %s553_s6 }
  0x39   : > { %s226_s30 = scalar_lea.vmem %s994_s0, %s555_s27  ;;  %285 = vmatpush1.msra.mxu0 %v255_v6  ;;  %583 = vmatprep.subr.mxu1 %v358_v13  ;;  %v247_v18 = vld [vmem:[#allocation2 + $0x20] sm:$0xff]  ;;  %v246_v19 = vld [vmem:[#allocation2 + $0x18] sm:$0xff]  ;;  %v245_v21 = vld [vmem:[#allocation2 + $0x10] sm:$0xff]  ;;  %s461_s10 = sshll.u32 %s221_s9, 4  ;;  %s947_s10 = int_to_ptr.vmem [resolvable:$true] %s461_s10 }
  0x3a   : > { %v229_v2 = vld [vmem:[%s226_s30] sm:$0xff]  ;;  %v230_v7 = vld [vmem:[%s226_s30 + $0x8] sm:$0xff]  ;;  %286 = vmatprep.subr.mxu0 %v254_v8  ;;  %584 = vmatpush3.msra.mxu1 %v358_v13  ;;  %v354_v23 = vld [vmem:[#allocation5 + $0x58] sm:$0xff]  ;;  %s952_s14 = scalar_lea.hbm %s998_s4, %s564_s11  ;;  %s954_s20 = scalar_lea.sflag [#allocation4], %s219_s5 }
  0x3b   : > { %234 = vperm.xlu0 %686, %v229_v2   ;;  %287 = vmatpush1.msra.mxu0 %v253_v9  ;;  %v355_v20 = vld [vmem:[#allocation5 + $0x60] sm:$0xff]  ;;  %v244_v22 = vld [vmem:[#allocation2 + $0x8] sm:$0xff]  ;;  %v353_v25 = vld [vmem:[#allocation5 + $0x50] sm:$0xff]  ;;  %s739_s22 = scalar_lea.vmem %s947_s10, 256  ;;  %s817_s19 = smov [#allocation7]  }
  0x3c   : > { %288 = vmatprep.subr.mxu0 %v252_v10  ;;  %585 = vmatprep.subr.mxu1 %v357_v14  ;;  %v243_v24 = vld [vmem:[#allocation2] sm:$0xff]  ;;  %v352_v26 = vld [vmem:[#allocation5 + $0x48] sm:$0xff]  ;;  %v350_v28 = vld [vmem:[#allocation5 + $0x38] sm:$0xff]  ;;  %p740_p10 = scmp.ne.s32.totalorder %s947_s10, %s739_s22  ;;  %s743_s23 = sshll.u32 %s817_s19, 4  ;;  %s744_s23 = int_to_ptr.vmem [resolvable:$false] %s743_s23 }
  0x3d   : > { %289 = vmatpush1.msra.mxu0 %v251_v11  ;;  %586 = vmatpush3.msra.mxu1 %v357_v14  ;;  %v351_v27 = vld [vmem:[#allocation5 + $0x40] sm:$0xff]  ;;  %v349_v29 = vld [vmem:[#allocation5 + $0x30] sm:$0xff]  ;;  %v348_v30 = vld [vmem:[#allocation5 + $0x28] sm:$0xff]  ;;  %s745_s27 = scalar_lea.vmem %s744_s23, 512  ;;  %p746_p11 = scmp.lt.s32.totalorder %s947_s10, %s744_s23 }
  0x3e   : > { %290 = vmatprep.subr.mxu0 %v250_v12  ;;  %587 = vmatprep.subr.mxu1 %v356_v17  ;;  %v347_v31 = vld [vmem:[#allocation5 + $0x20] sm:$0xff]  ;;  %v346_v32 = vld [vmem:[#allocation5 + $0x18] sm:$0xff]  ;;  %v345_v33 = vld [vmem:[#allocation5 + $0x10] sm:$0xff]  ;;  %p741_p7 = pnand %p740_p10, %p883_p5  ;;  %p747_p0 = scmp.lt.s32.totalorder %s745_s27, %s739_s22 }
  0x3f   : > { %237 = vperm.xlu0 %686, %v230_v7   ;;  %291 = vmatpush1.msra.mxu0 %v249_v15  ;;  %v344_v40 = vld [vmem:[#allocation5 + $0x8] sm:$0xff]  ;;  %v343_v41 = vld [vmem:[#allocation5] sm:$0xff] }
  0x40   : > { %292 = vmatprep.subr.mxu0 %v248_v16  ;;  %588 = vmatpush3.msra.mxu1 %v356_v17  ;;  %v558_v45 = vld [vmem:[%s997_s3] ss:$0 sm:$0xff]  ;;  %p742_p8 = pneg %p741_p7  ;;  %p748_p1 = por %p747_p0, %p746_p11 }
  0x41   : > { %293 = vmatpush1.msra.mxu0 %v247_v18  ;;  %589 = vmatprep.subr.mxu1 %v355_v20 }
  0x42   : > { %294 = vmatprep.subr.mxu0 %v246_v19  ;;  %590 = vmatpush3.msra.mxu1 %v355_v20  ;;  %p749_p3 = pnand %p748_p1, %p742_p8 }
  0x43   : > { %295 = vmatpush1.msra.mxu0 %v245_v21  ;;  %591 = vmatprep.subr.mxu1 %v354_v23 }
  0x44   : > { %296 = vmatprep.subr.mxu0 %v244_v22  ;;  %592 = vmatpush3.msra.mxu1 %v354_v23 }
  0x45   : > { %297 = vmatpush1.msra.mxu0 %v243_v24  ;;  %593 = vmatprep.subr.mxu1 %v353_v25 }
  0x46   : > { %594 = vmatpush3.msra.mxu1 %v353_v25 }
  0x47   : > { %595 = vmatprep.subr.mxu1 %v352_v26 }
  0x48   : > { %596 = vmatpush3.msra.mxu1 %v352_v26 }
  0x49   : > { %597 = vmatprep.subr.mxu1 %v351_v27 }
  0x4a   : > { %598 = vmatpush3.msra.mxu1 %v351_v27 }
  0x4b   : > { %599 = vmatprep.subr.mxu1 %v350_v28 }
  0x4c   : > { %600 = vmatpush3.msra.mxu1 %v350_v28 }
  0x4d   : > { %601 = vmatprep.subr.mxu1 %v349_v29 }
  0x4e   : > { %602 = vmatpush3.msra.mxu1 %v349_v29 }
  0x4f   : > { %603 = vmatprep.subr.mxu1 %v348_v30 }
  0x50   : > { %604 = vmatpush3.msra.mxu1 %v348_v30 }
  0x51   : > { %605 = vmatprep.subr.mxu1 %v347_v31 }
  0x52   : > { %606 = vmatpush3.msra.mxu1 %v347_v31 }
  0x53   : > { %607 = vmatprep.subr.mxu1 %v346_v32 }
  0x54   : > { %608 = vmatpush3.msra.mxu1 %v346_v32 }
  0x55   : > { %609 = vmatprep.subr.mxu1 %v345_v33 }
  0x56   : > { %610 = vmatpush3.msra.mxu1 %v345_v33 }
  0x57   : > { %611 = vmatprep.subr.mxu1 %v344_v40 }
  0x58   : > { %612 = vmatpush3.msra.mxu1 %v344_v40 }
  0x59   : > { %613 = vmatprep.subr.mxu1 %v343_v41 }
  0x5a   : > { %614 = vmatpush3.msra.mxu1 %v343_v41 }
  0xb6   : > { %v235_v36 = vpop.permute.xlu0 %234 }
  0xb7   : > { %vm239_vm1 = vcmp.eq.s32.totalorder %v235_v36, %v232_v35 }
  0xb8   : > { %v241_v37 = vsel %vm239_vm1, 1.0, %v816_v1 }
  0xb9   : > { %556 = vmatmul.mubr.msk.f32.vlgmr.msra.gmra.mxu0 %vm259_vm0, %v241_v37 }
  0xba   : > { %v238_v38 = vpop.permute.xlu0 %237  ;;  %336 = vmatprep.mubr.f32.mxu0 %v816_v1 }
  0xbb   : > { %vm240_vm2 = vcmp.eq.s32.totalorder %v238_v38, %v232_v35 }
  0xbc   : > { %v242_v39 = vsel %vm240_vm2, 1.0, %v816_v1 }
  0xbd   : > { %557 = vmatmul.mubr.msk.f32.gmra.mxu0 %vm259_vm0, %v242_v39 }
 0x179   : > { %v332_v42 = vpop.f32.mrf.mxu0 }
 0x17a   : > { %615 = vmatprep.mubr.f32.mxu1 %v332_v42 }
 0x17b   : > { %v334_v43 = vpop.f32.mrf.mxu0 }
 0x17d   : > { %v338_v44 = vpop.f32.mrf.mxu0 }
 0x17e   : > { %616 = vmatmul.mubr.f32.vlgmr.msra.gmra.mxu1 %v338_v44 }
 0x17f   : > { %v340_v51 = vpop.f32.mrf.mxu0 }
 0x23e   : > { %v617_v46 = vpop.f32.mrf.mxu1 }
 0x23f   : > { %v438_v47 = vadd.f32 %v617_v46, %v558_v45 }
 0x240   : > { %v432_v48 = vpop.f32.mrf.mxu1 }
 0x241   : > { %v442_v49 = vmax.f32 %v438_v47, 0.0  ;;  %v433_v50 = vadd.f32 %v558_v45, %v432_v48 }
 0x243   : > { %v444_v52 = vadd.f32 %v442_v49, %v340_v51  ;;  %v441_v53 = vmax.f32 %v433_v50, 0.0 }
 0x245   : > { %446 = vst [vmem:[%s221_s9 + $0x8] sm:$0xff] %v444_v52  ;;  %v443_v54 = vadd.f32 %v441_v53, %v334_v43 }
 0x247   : > { %445 = vst [vmem:[%s221_s9] sm:$0xff] %v443_v54 }
 0x248   : > { %752 = shalt.err (!%p749_p3)
}
 0x249   : > { %s753_s28 = scalar_lea.hbm %s952_s14, 256  ;;  %s757_s5 = scalar_lea.hbm %s998_s4, 512 }
 0x24a   : > { %p754_p2 = scmp.ne.s32.totalorder %s952_s14, %s753_s28  ;;  %p758_p6 = scmp.lt.s32.totalorder %s952_s14, %s998_s4 }
 0x24b   : > { %p759_p9 = scmp.lt.s32.totalorder %s757_s5, %s753_s28 }
 0x24c   : > { %p755_p4 = pnand %p754_p2, %p883_p5 }
 0x24d   : > { %p760_p12 = por %p759_p9, %p758_p6 }
 0x24e   : > { %p756_p13 = pneg %p755_p4 }
 0x250   : > { %p761_p10 = pnand %p760_p12, %p756_p13 }
 0x252   : > { %764 = shalt.err (!%p761_p10)
}
 0x253   : > { %s818_s8 = smov 128   ;;  %s819_s9 = smov 8  }
 0x254   : > { %626 = dma.vmem_to_hbm [thread:$0]  (%p883_p5), %s947_s10, 256, %s952_s14, %s954_s20, %s818_s8, %s818_s8, %s819_s9  }
 0x255 PF: > { %p643_p7 = scmp.ge.s32.totalorder %s807_s18, 2  ;;  %s476_s11 = sand.u32 1, %s795_s15  }
 0x256   : > { %p1008_p8 = scmp.ne.s32.totalorder %s1001_s26, 0  ;;  %s477_s12 = scalar_lea.sflag [#allocation4], %s476_s11 }
 0x258   : > { %p636_p11 = pnand %p643_p7, %p1008_p8 }
 0x25a   : > { %p637_p0 = pneg %p636_p11 }
 0x25c   : > { %790 = dma.done.wait (%p637_p0), %s477_s12, 256  }
 0x25d   : > { %792 = vsyncadd (%p637_p0), %s477_s12, 4294967040  ;;  %p16_p1 = scmp.ge.s32.totalorder %s870_s21, 4   ;;  %s1009_s15 = smov %s799_s16 }
 0x25e   : > { %s1010_s16 = smov %s803_s17  ;;  %s1011_s17 = smov %s881_s24 }
 0x25f   : > { %s1012_s18 = smov %s870_s21  ;;  %18 = sbr.rel (!%p16_p1) target bundleno = 5 (0x5), region = 80 }
 0x264   :  { %482 = vsyncpa [#allocation3], 1 }
 0x265   :  { %484 = vsyncpa [#allocation3 + $0x1], 1 }
 0x266   :  { %485 = vsyncpa [#allocation6], 1 }
 0x267   :  { %486 = vsyncpa [#allocation4], 1 }
 0x268   :  { %488 = vsyncpa [#allocation4 + $0x1], 1 }

</bundles_post_ra>
